<compile_context>
chip_gen: v5e
topology: v5e:2x2
jax: 0.10.0
libtpu: 0.0.40
codegen_flags: <defaults>
</compile_context>

<pallas_src>
import functools

import jax
import jax.numpy as jnp
from jax import lax
from jax.experimental import pallas as pl
from jax.experimental.pallas import tpu as pltpu

EPS = 1e-5  # nn.BatchNorm2d default eps


def _round_up(x, m):
    return ((x + m - 1) // m) * m


def _vmem_limit_bytes():
    # ~32 MiB on v7x (64 MiB physical VMEM), ~64 MiB on v5e/v6e (128 MiB).
    try:
        cap = pltpu.get_tpu_info().vmem_capacity_bytes
    except Exception:
        cap = 128 * 1024 * 1024
    return int(min(64 * 1024 * 1024, max(32 * 1024 * 1024, cap // 2)))


# ---------------------------------------------------------------------------
# Pallas kernels
# ---------------------------------------------------------------------------
def _conv9_stats_kernel(x_ref, w_ref, mask_ref, y_ref, sum_ref, sq_ref,
                        *, stride, ws, tm, win):
    """One output M-tile of a 3x3 conv as 9 shifted [Cout,Cin]x[Cin,TM] MXU
    matmuls over the resident phase-flat input, plus masked BN partial sums."""
    i = pl.program_id(0)
    m0 = pl.multiple_of(i * tm, tm)          # lane-aligned window start
    c_out = y_ref.shape[0]
    acc = jnp.zeros((c_out, tm), jnp.float32)
    s = stride
    for ph in range(s * s):                  # phase (a, b) of the space-to-depth split
        a, b = ph // s, ph % s
        xw = x_ref[ph, :, pl.ds(m0, win)]    # [Cin, win], win = tm + halo (aligned)
        for dy in range(a, 3, s):
            for dx in range(b, 3, s):
                off = (dy // s) * ws + (dx // s)      # static per-tap lane offset
                xs = xw[:, off:off + tm]              # [Cin, tm]
                acc = acc + jnp.dot(w_ref[dy * 3 + dx], xs,
                                    preferred_element_type=jnp.float32)
    y_ref[...] = acc.astype(y_ref.dtype)
    mk = mask_ref[...].astype(jnp.float32)   # [1, tm]; 1.0 on valid output columns
    masked = acc * mk
    sum_ref[0] = jnp.sum(masked, axis=1, keepdims=True)        # [Cout, 1]
    sq_ref[0] = jnp.sum(masked * acc, axis=1, keepdims=True)   # [Cout, 1]


def _bn_add_relu_kernel(y_ref, scale_ref, bias_ref, r_ref, o_ref):
    """Pass 2: y*scale + bias + residual, ReLU (channels x TM tiles)."""
    y = y_ref[...].astype(jnp.float32)
    r = r_ref[...].astype(jnp.float32)
    o_ref[...] = jnp.maximum(y * scale_ref[...] + bias_ref[...] + r,
                             0.0).astype(o_ref.dtype)


# ---------------------------------------------------------------------------
# pallas_call wrappers
# ---------------------------------------------------------------------------
def _conv3x3_bn_stats(x_cnhw, w_oihw, gamma, beta, stride, tm, compute_dtype):
    """3x3 conv (padding=1, given stride) on a [C, N, H, W] activation.

    Returns (y_flat, scale, bias, meta).  y_flat is the raw conv output in the
    flat per-image (Hs x Ws) grid layout, [Cout, Mtot] f32.  scale/bias are the
    folded train-mode BatchNorm affine parameters from global batch stats.
    """
    c_in, n, h, w = x_cnhw.shape
    c_out = w_oihw.shape[0]
    s = stride
    assert h % s == 0 and w % s == 0
    hp, wp = h + 2, w + 2
    hs, ws = hp // s, wp // s                # per-phase padded grid
    ho, wo = h // s, w // s                  # valid output extent
    m_img = hs * ws
    m_real = n * m_img

    tm_eff = max(128, min(_round_up(tm, 128), _round_up(m_real, 128)))
    m_tot = _round_up(m_real, tm_eff)
    o_max = (2 // s) * ws + (2 // s)         # largest tap offset along flat M
    halo = _round_up(o_max, 128)
    win = tm_eff + halo
    m_x = m_tot + halo
    n_tiles = m_tot // tm_eff

    # Phase-split (space-to-depth for stride 2), flatten, pad:  [s*s, Cin, Mx].
    xp = jnp.pad(x_cnhw, ((0, 0), (0, 0), (1, 1), (1, 1)))
    xf = xp.reshape(c_in, n, hs, s, ws, s).transpose(3, 5, 0, 1, 2, 4)
    xf = xf.reshape(s * s, c_in, m_real)
    xf = jnp.pad(xf, ((0, 0), (0, 0), (0, m_x - m_real))).astype(compute_dtype)

    # Per-tap weight matrices [9, Cout, Cin]  (tap index = dy*3 + dx).
    w_taps = jnp.transpose(w_oihw, (2, 3, 0, 1)).reshape(9, c_out, c_in)
    w_taps = w_taps.astype(compute_dtype)

    # Validity mask over the flat output axis: the right/bottom margins of the
    # Hs x Ws per-image grid and the batch tail padding are garbage columns and
    # must not contribute to BatchNorm statistics.
    idx = jnp.arange(m_tot, dtype=jnp.int32)
    r = idx % m_img
    valid = (idx < m_real) & ((r % ws) < wo) & ((r // ws) < ho)
    mask = valid.astype(compute_dtype).reshape(1, m_tot)

    kernel = functools.partial(_conv9_stats_kernel, stride=s, ws=ws,
                               tm=tm_eff, win=win)
    itemsize = jnp.dtype(compute_dtype).itemsize
    bytes_accessed = int(xf.size * itemsize + w_taps.size * itemsize
                         + mask.size * itemsize + c_out * m_tot * 4
                         + 2 * n_tiles * c_out * 4)

    y, sums, sqs = pl.pallas_call(
        kernel,
        out_shape=(
            jax.ShapeDtypeStruct((c_out, m_tot), jnp.float32),
            jax.ShapeDtypeStruct((n_tiles, c_out, 1), jnp.float32),
            jax.ShapeDtypeStruct((n_tiles, c_out, 1), jnp.float32),
        ),
        grid=(n_tiles,),
        in_specs=[
            pl.BlockSpec((s * s, c_in, m_x), lambda i: (0, 0, 0)),  # resident acts
            pl.BlockSpec((9, c_out, c_in), lambda i: (0, 0, 0)),    # resident taps
            pl.BlockSpec((1, tm_eff), lambda i: (0, i)),            # validity mask
        ],
        out_specs=(
            pl.BlockSpec((c_out, tm_eff), lambda i: (0, i)),        # raw conv out
            pl.BlockSpec((1, c_out, 1), lambda i: (i, 0, 0)),       # per-tile sum
            pl.BlockSpec((1, c_out, 1), lambda i: (i, 0, 0)),       # per-tile sumsq
        ),
        compiler_params=pltpu.CompilerParams(
            dimension_semantics=("parallel",),
            vmem_limit_bytes=_vmem_limit_bytes()),
        cost_estimate=pl.CostEstimate(
            flops=int(2 * 9 * c_in * c_out * m_tot), transcendentals=0,
            bytes_accessed=bytes_accessed),
    )(xf, w_taps, mask)

    # Fold global train-mode batch statistics into per-channel scale / bias.
    count = float(n * ho * wo)
    total = jnp.sum(sums[:, :, 0], axis=0)
    total_sq = jnp.sum(sqs[:, :, 0], axis=0)
    mean = total / count
    # TODO(synk): Welford-style combine of the per-tile partials if
    # E[x^2]-E[x]^2 cancellation ever matters at very large batch*spatial.
    var = jnp.maximum(total_sq / count - mean * mean, 0.0)     # biased (train mode)
    scale = gamma.astype(jnp.float32) * lax.rsqrt(var + EPS)
    bias = beta.astype(jnp.float32) - mean * scale
    meta = dict(hs=hs, ws=ws, ho=ho, wo=wo, m_img=m_img, m_real=m_real,
                m_tot=m_tot, tm=tm_eff)
    return y, scale.reshape(c_out, 1), bias.reshape(c_out, 1), meta


def _bn_add_relu(y, scale, bias, res, tm, out_dtype):
    """Pass 2 over [Cout, Mtot]: BN apply + residual add + ReLU, tiled over M."""
    c_out, m_tot = y.shape
    n_tiles = m_tot // tm
    bytes_accessed = int(y.size * 4 + res.size * res.dtype.itemsize
                         + 2 * c_out * 4
                         + c_out * m_tot * jnp.dtype(out_dtype).itemsize)
    return pl.pallas_call(
        _bn_add_relu_kernel,
        out_shape=jax.ShapeDtypeStruct((c_out, m_tot), out_dtype),
        grid=(n_tiles,),
        in_specs=[
            pl.BlockSpec((c_out, tm), lambda i: (0, i)),
            pl.BlockSpec((c_out, 1), lambda i: (0, 0)),
            pl.BlockSpec((c_out, 1), lambda i: (0, 0)),
            pl.BlockSpec((c_out, tm), lambda i: (0, i)),
        ],
        out_specs=pl.BlockSpec((c_out, tm), lambda i: (0, i)),
        compiler_params=pltpu.CompilerParams(
            dimension_semantics=("parallel",),
            vmem_limit_bytes=_vmem_limit_bytes()),
        cost_estimate=pl.CostEstimate(
            flops=int(4 * c_out * m_tot), transcendentals=0,
            bytes_accessed=bytes_accessed),
    )(y, scale, bias, res)


# ---------------------------------------------------------------------------
# BasicBlockCifar forward
# ---------------------------------------------------------------------------
def basic_block_forward(x_nchw, params, stride=1, option='A', *,
                        tm=2048, compute_dtype=jnp.bfloat16):
    """conv1 -> bn1 -> relu -> conv2 -> bn2 -> (+shortcut) -> relu (train-mode BN)."""
    w1, g1, b1, w2, g2, b2 = params
    n, c_in, h, w = x_nchw.shape
    planes = w1.shape[0]

    # Internal layout: channels-major [C, N, H, W] (C -> sublanes, flat HW -> lanes).
    x_cn = jnp.transpose(x_nchw, (1, 0, 2, 3))

    # ---- conv1 (stride) + BN1 statistics --------------------------------------
    y1, sc1, bi1, m1 = _conv3x3_bn_stats(x_cn, w1, g1, b1, stride, tm, compute_dtype)
    # BN1 apply + ReLU fused (by XLA) into the re-layout that builds conv2's input.
    a1 = y1[:, :m1['m_real']].reshape(planes, n, m1['hs'], m1['ws'])
    a1 = a1[:, :, :m1['ho'], :m1['wo']]
    a1 = jnp.maximum(a1 * sc1.reshape(planes, 1, 1, 1)
                     + bi1.reshape(planes, 1, 1, 1), 0.0)

    # ---- conv2 (stride 1) + BN2 statistics ------------------------------------
    y2, sc2, bi2, m2 = _conv3x3_bn_stats(a1, w2, g2, b2, 1, tm, compute_dtype)

    # ---- shortcut (identity or CIFAR option 'A') ------------------------------
    if stride != 1 or c_in != planes:
        assert option == 'A', "only option 'A' (LambdaLayer) shortcut supported"
        pad = planes // 4
        assert c_in + 2 * pad == planes
        sc = jnp.pad(x_cn[:, :, ::2, ::2], ((pad, pad), (0, 0), (0, 0), (0, 0)))
    else:
        sc = x_cn
    # Residual in conv2's flat output layout, compute dtype, channels unpadded.
    res = jnp.pad(sc, ((0, 0), (0, 0), (0, m2['hs'] - m2['ho']),
                       (0, m2['ws'] - m2['wo'])))
    res = res.reshape(planes, m2['m_real'])
    res = jnp.pad(res, ((0, 0), (0, m2['m_tot'] - m2['m_real'])))
    res = res.astype(compute_dtype)

    # ---- BN2 apply + residual add + ReLU (Pallas pass 2) ----------------------
    out = _bn_add_relu(y2, sc2, bi2, res, m2['tm'], x_nchw.dtype)
    out = out[:, :m2['m_real']].reshape(planes, n, m2['hs'], m2['ws'])
    out = out[:, :, :m2['ho'], :m2['wo']]
    return jnp.transpose(out, (1, 0, 2, 3))          # back to NCHW


# ---------------------------------------------------------------------------
# Pure-JAX reference (training-mode BatchNorm)
# ---------------------------------------------------------------------------
def _ref_forward(x, w1, g1, b1, w2, g2, b2, stride, planes):
    def bn(y, g, b):
        m = jnp.mean(y, axis=(0, 2, 3), keepdims=True)
        v = jnp.mean(jnp.square(y - m), axis=(0, 2, 3), keepdims=True)
        return (y - m) * lax.rsqrt(v + EPS) * g.reshape(1, -1, 1, 1) + b.reshape(1, -1, 1, 1)

    o = lax.conv_general_dilated(x, w1, (stride, stride), ((1, 1), (1, 1)),
                                 dimension_numbers=('NCHW', 'OIHW', 'NCHW'))
    o = jnp.maximum(bn(o, g1, b1), 0.0)
    o = lax.conv_general_dilated(o, w2, (1, 1), ((1, 1), (1, 1)),
                                 dimension_numbers=('NCHW', 'OIHW', 'NCHW'))
    o = bn(o, g2, b2)
    if stride != 1 or x.shape[1] != planes:
        pad = planes // 4
        s = jnp.pad(x[:, :, ::2, ::2], ((0, 0), (pad, pad), (0, 0), (0, 0)))
    else:
        s = x
    return jnp.maximum(o + s, 0.0)


if __name__ == "__main__":
    key = jax.random.PRNGKey(0)
    n, in_planes, h, w = 2, 8, 16, 16
    planes, stride = 16, 2                       # exercises the option-A shortcut
    k1, k2, k3, k4, k5, k6, kx = jax.random.split(key, 7)

    x = jax.random.normal(kx, (n, in_planes, h, w), jnp.float32)
    w1 = 0.1 * jax.random.normal(k1, (planes, in_planes, 3, 3), jnp.float32)
    g1 = 1.0 + 0.1 * jax.random.normal(k2, (planes,), jnp.float32)
    b1 = 0.1 * jax.random.normal(k3, (planes,), jnp.float32)
    w2 = 0.1 * jax.random.normal(k4, (planes, planes, 3, 3), jnp.float32)
    g2 = 1.0 + 0.1 * jax.random.normal(k5, (planes,), jnp.float32)
    b2 = 0.1 * jax.random.normal(k6, (planes,), jnp.float32)
    params = (w1, g1, b1, w2, g2, b2)

    ref = _ref_forward(x, w1, g1, b1, w2, g2, b2, stride, planes)

    # f32 path with a deliberately small M tile so several tiles (and the
    # cross-tile two-pass BatchNorm combine) are genuinely exercised.
    out_f32 = basic_block_forward(x, params, stride=stride, option='A',
                                  tm=128, compute_dtype=jnp.float32)
    out_f32 = jax.block_until_ready(out_f32)
    assert out_f32.shape == ref.shape == (n, planes, h // stride, w // stride)
    err = float(jnp.max(jnp.abs(out_f32 - ref)))
    assert jnp.allclose(out_f32, ref, atol=2e-3, rtol=2e-3), err

    # bf16 matmul-operand path (default perf config) — looser tolerance.
    out_bf16 = basic_block_forward(x, params, stride=stride, option='A')
    out_bf16 = jax.block_until_ready(out_bf16)
    err = float(jnp.max(jnp.abs(out_bf16 - ref)))
    assert jnp.allclose(out_bf16, ref, atol=8e-2, rtol=8e-2), err

    # identity-shortcut branch (stride=1, in_planes == planes).
    x2 = jax.random.normal(kx, (n, planes, h, w), jnp.float32)
    w1b = 0.1 * jax.random.normal(k1, (planes, planes, 3, 3), jnp.float32)
    params2 = (w1b, g1, b1, w2, g2, b2)
    ref_id = _ref_forward(x2, w1b, g1, b1, w2, g2, b2, 1, planes)
    out_id = basic_block_forward(x2, params2, stride=1, option='A',
                                 tm=256, compute_dtype=jnp.float32)
    out_id = jax.block_until_ready(out_id)
    err = float(jnp.max(jnp.abs(out_id - ref_id)))
    assert jnp.allclose(out_id, ref_id, atol=2e-3, rtol=2e-3), err

    print("KERNEL_OK")
</pallas_src>

<mosaic_0001>
module attributes {stable_mosaic.version = 11 : i64} {
  func.func @_conv9_stats_kernel(%arg0: i32, %arg1: memref<4x8x384xf32, #tpu.memory_space<vmem>>, %arg2: memref<9x16x8xf32, #tpu.memory_space<vmem>>, %arg3: memref<1x128xf32, #tpu.memory_space<vmem>>, %arg4: memref<16x128xf32, #tpu.memory_space<vmem>>, %arg5: memref<1x16x1xf32, #tpu.memory_space<vmem>>, %arg6: memref<1x16x1xf32, #tpu.memory_space<vmem>>) attributes {dimension_semantics = [#tpu.dimension_semantics<parallel>], iteration_bounds = array<i64: 2>, scalar_prefetch = 0 : i64, scratch_operands = 0 : i64, tpu.core_type = #tpu.core_type<tc>, window_params = [{pipeline_mode = #tpu.pipeline_mode<synchronous>, transform_indices = @transform_0, window_bounds = array<i64: 4, 8, 384>}, {pipeline_mode = #tpu.pipeline_mode<synchronous>, transform_indices = @transform_1, window_bounds = array<i64: 9, 16, 8>}, {transform_indices = @transform_2, window_bounds = array<i64: 1, 128>}, {transform_indices = @transform_3, window_bounds = array<i64: 16, 128>}, {transform_indices = @transform_4, window_bounds = array<i64: 1, 16, 1>}, {transform_indices = @transform_5, window_bounds = array<i64: 1, 16, 1>}]} {
    %c128_i32 = arith.constant 128 : i32
    %0 = arith.muli %arg0, %c128_i32 : i32
    %1 = tpu.assume_multiple %0, 128 : i32
    %cst = arith.constant 0.000000e+00 : f32
    %2 = vector.broadcast %cst : f32 to vector<16x128xf32>
    %c0 = arith.constant 0 : index
    %c0_0 = arith.constant 0 : index
    %3 = arith.index_cast %1 : i32 to index
    %4 = vector.load %arg1[%c0, %c0_0, %3] : memref<4x8x384xf32, #tpu.memory_space<vmem>>, vector<1x8x256xf32>
    %5 = vector.shape_cast %4 : vector<1x8x256xf32> to vector<8x256xf32>
    %6 = vector.extract_strided_slice %5 {offsets = [0, 0], sizes = [8, 128], strides = [1, 1]} : vector<8x256xf32> to vector<8x128xf32>
    %c0_1 = arith.constant 0 : index
    %c0_2 = arith.constant 0 : index
    %c0_3 = arith.constant 0 : index
    %7 = vector.load %arg2[%c0_1, %c0_2, %c0_3] : memref<9x16x8xf32, #tpu.memory_space<vmem>>, vector<1x16x8xf32>
    %8 = vector.shape_cast %7 : vector<1x16x8xf32> to vector<16x8xf32>
    %cst_4 = arith.constant dense<0.000000e+00> : vector<16x128xf32>
    %9 = tpu.matmul %8, %6, %cst_4 {dimension_numbers = #tpu.dot_dimension_numbers<[1], [0], [0], [1], [0, 0, 1, 1], [], []>} : vector<16x8xf32>, vector<8x128xf32>, vector<16x128xf32> -> vector<16x128xf32>
    %10 = arith.addf %2, %9 : vector<16x128xf32>
    %11 = vector.extract_strided_slice %5 {offsets = [0, 1], sizes = [8, 128], strides = [1, 1]} : vector<8x256xf32> to vector<8x128xf32>
    %c2 = arith.constant 2 : index
    %c0_5 = arith.constant 0 : index
    %c0_6 = arith.constant 0 : index
    %12 = vector.load %arg2[%c2, %c0_5, %c0_6] : memref<9x16x8xf32, #tpu.memory_space<vmem>>, vector<1x16x8xf32>
    %13 = vector.shape_cast %12 : vector<1x16x8xf32> to vector<16x8xf32>
    %cst_7 = arith.constant dense<0.000000e+00> : vector<16x128xf32>
    %14 = tpu.matmul %13, %11, %cst_7 {dimension_numbers = #tpu.dot_dimension_numbers<[1], [0], [0], [1], [0, 0, 1, 1], [], []>} : vector<16x8xf32>, vector<8x128xf32>, vector<16x128xf32> -> vector<16x128xf32>
    %15 = arith.addf %10, %14 : vector<16x128xf32>
    %16 = vector.extract_strided_slice %5 {offsets = [0, 9], sizes = [8, 128], strides = [1, 1]} : vector<8x256xf32> to vector<8x128xf32>
    %c6 = arith.constant 6 : index
    %c0_8 = arith.constant 0 : index
    %c0_9 = arith.constant 0 : index
    %17 = vector.load %arg2[%c6, %c0_8, %c0_9] : memref<9x16x8xf32, #tpu.memory_space<vmem>>, vector<1x16x8xf32>
    %18 = vector.shape_cast %17 : vector<1x16x8xf32> to vector<16x8xf32>
    %cst_10 = arith.constant dense<0.000000e+00> : vector<16x128xf32>
    %19 = tpu.matmul %18, %16, %cst_10 {dimension_numbers = #tpu.dot_dimension_numbers<[1], [0], [0], [1], [0, 0, 1, 1], [], []>} : vector<16x8xf32>, vector<8x128xf32>, vector<16x128xf32> -> vector<16x128xf32>
    %20 = arith.addf %15, %19 : vector<16x128xf32>
    %21 = vector.extract_strided_slice %5 {offsets = [0, 10], sizes = [8, 128], strides = [1, 1]} : vector<8x256xf32> to vector<8x128xf32>
    %c8 = arith.constant 8 : index
    %c0_11 = arith.constant 0 : index
    %c0_12 = arith.constant 0 : index
    %22 = vector.load %arg2[%c8, %c0_11, %c0_12] : memref<9x16x8xf32, #tpu.memory_space<vmem>>, vector<1x16x8xf32>
    %23 = vector.shape_cast %22 : vector<1x16x8xf32> to vector<16x8xf32>
    %cst_13 = arith.constant dense<0.000000e+00> : vector<16x128xf32>
    %24 = tpu.matmul %23, %21, %cst_13 {dimension_numbers = #tpu.dot_dimension_numbers<[1], [0], [0], [1], [0, 0, 1, 1], [], []>} : vector<16x8xf32>, vector<8x128xf32>, vector<16x128xf32> -> vector<16x128xf32>
    %25 = arith.addf %20, %24 : vector<16x128xf32>
    %c1 = arith.constant 1 : index
    %c0_14 = arith.constant 0 : index
    %26 = arith.index_cast %1 : i32 to index
    %27 = vector.load %arg1[%c1, %c0_14, %26] : memref<4x8x384xf32, #tpu.memory_space<vmem>>, vector<1x8x256xf32>
    %28 = vector.shape_cast %27 : vector<1x8x256xf32> to vector<8x256xf32>
    %29 = vector.extract_strided_slice %28 {offsets = [0, 0], sizes = [8, 128], strides = [1, 1]} : vector<8x256xf32> to vector<8x128xf32>
    %c1_15 = arith.constant 1 : index
    %c0_16 = arith.constant 0 : index
    %c0_17 = arith.constant 0 : index
    %30 = vector.load %arg2[%c1_15, %c0_16, %c0_17] : memref<9x16x8xf32, #tpu.memory_space<vmem>>, vector<1x16x8xf32>
    %31 = vector.shape_cast %30 : vector<1x16x8xf32> to vector<16x8xf32>
    %cst_18 = arith.constant dense<0.000000e+00> : vector<16x128xf32>
    %32 = tpu.matmul %31, %29, %cst_18 {dimension_numbers = #tpu.dot_dimension_numbers<[1], [0], [0], [1], [0, 0, 1, 1], [], []>} : vector<16x8xf32>, vector<8x128xf32>, vector<16x128xf32> -> vector<16x128xf32>
    %33 = arith.addf %25, %32 : vector<16x128xf32>
    %34 = vector.extract_strided_slice %28 {offsets = [0, 9], sizes = [8, 128], strides = [1, 1]} : vector<8x256xf32> to vector<8x128xf32>
    %c7 = arith.constant 7 : index
    %c0_19 = arith.constant 0 : index
    %c0_20 = arith.constant 0 : index
    %35 = vector.load %arg2[%c7, %c0_19, %c0_20] : memref<9x16x8xf32, #tpu.memory_space<vmem>>, vector<1x16x8xf32>
    %36 = vector.shape_cast %35 : vector<1x16x8xf32> to vector<16x8xf32>
    %cst_21 = arith.constant dense<0.000000e+00> : vector<16x128xf32>
    %37 = tpu.matmul %36, %34, %cst_21 {dimension_numbers = #tpu.dot_dimension_numbers<[1], [0], [0], [1], [0, 0, 1, 1], [], []>} : vector<16x8xf32>, vector<8x128xf32>, vector<16x128xf32> -> vector<16x128xf32>
    %38 = arith.addf %33, %37 : vector<16x128xf32>
    %c2_22 = arith.constant 2 : index
    %c0_23 = arith.constant 0 : index
    %39 = arith.index_cast %1 : i32 to index
    %40 = vector.load %arg1[%c2_22, %c0_23, %39] : memref<4x8x384xf32, #tpu.memory_space<vmem>>, vector<1x8x256xf32>
    %41 = vector.shape_cast %40 : vector<1x8x256xf32> to vector<8x256xf32>
    %42 = vector.extract_strided_slice %41 {offsets = [0, 0], sizes = [8, 128], strides = [1, 1]} : vector<8x256xf32> to vector<8x128xf32>
    %c3 = arith.constant 3 : index
    %c0_24 = arith.constant 0 : index
    %c0_25 = arith.constant 0 : index
    %43 = vector.load %arg2[%c3, %c0_24, %c0_25] : memref<9x16x8xf32, #tpu.memory_space<vmem>>, vector<1x16x8xf32>
    %44 = vector.shape_cast %43 : vector<1x16x8xf32> to vector<16x8xf32>
    %cst_26 = arith.constant dense<0.000000e+00> : vector<16x128xf32>
    %45 = tpu.matmul %44, %42, %cst_26 {dimension_numbers = #tpu.dot_dimension_numbers<[1], [0], [0], [1], [0, 0, 1, 1], [], []>} : vector<16x8xf32>, vector<8x128xf32>, vector<16x128xf32> -> vector<16x128xf32>
    %46 = arith.addf %38, %45 : vector<16x128xf32>
    %47 = vector.extract_strided_slice %41 {offsets = [0, 1], sizes = [8, 128], strides = [1, 1]} : vector<8x256xf32> to vector<8x128xf32>
    %c5 = arith.constant 5 : index
    %c0_27 = arith.constant 0 : index
    %c0_28 = arith.constant 0 : index
    %48 = vector.load %arg2[%c5, %c0_27, %c0_28] : memref<9x16x8xf32, #tpu.memory_space<vmem>>, vector<1x16x8xf32>
    %49 = vector.shape_cast %48 : vector<1x16x8xf32> to vector<16x8xf32>
    %cst_29 = arith.constant dense<0.000000e+00> : vector<16x128xf32>
    %50 = tpu.matmul %49, %47, %cst_29 {dimension_numbers = #tpu.dot_dimension_numbers<[1], [0], [0], [1], [0, 0, 1, 1], [], []>} : vector<16x8xf32>, vector<8x128xf32>, vector<16x128xf32> -> vector<16x128xf32>
    %51 = arith.addf %46, %50 : vector<16x128xf32>
    %c3_30 = arith.constant 3 : index
    %c0_31 = arith.constant 0 : index
    %52 = arith.index_cast %1 : i32 to index
    %53 = vector.load %arg1[%c3_30, %c0_31, %52] : memref<4x8x384xf32, #tpu.memory_space<vmem>>, vector<1x8x256xf32>
    %54 = vector.shape_cast %53 : vector<1x8x256xf32> to vector<8x256xf32>
    %55 = vector.extract_strided_slice %54 {offsets = [0, 0], sizes = [8, 128], strides = [1, 1]} : vector<8x256xf32> to vector<8x128xf32>
    %c4 = arith.constant 4 : index
    %c0_32 = arith.constant 0 : index
    %c0_33 = arith.constant 0 : index
    %56 = vector.load %arg2[%c4, %c0_32, %c0_33] : memref<9x16x8xf32, #tpu.memory_space<vmem>>, vector<1x16x8xf32>
    %57 = vector.shape_cast %56 : vector<1x16x8xf32> to vector<16x8xf32>
    %cst_34 = arith.constant dense<0.000000e+00> : vector<16x128xf32>
    %58 = tpu.matmul %57, %55, %cst_34 {dimension_numbers = #tpu.dot_dimension_numbers<[1], [0], [0], [1], [0, 0, 1, 1], [], []>} : vector<16x8xf32>, vector<8x128xf32>, vector<16x128xf32> -> vector<16x128xf32>
    %59 = arith.addf %51, %58 : vector<16x128xf32>
    %c0_35 = arith.constant 0 : index
    %c0_36 = arith.constant 0 : index
    %60 = vector.load %arg4[%c0_35, %c0_36] : memref<16x128xf32, #tpu.memory_space<vmem>>, vector<16x128xf32>
    tpu.vector_store %arg4[%c0_35, %c0_36], %59 {strides = array<i32>} : memref<16x128xf32, #tpu.memory_space<vmem>>, vector<16x128xf32>,
    %c0_37 = arith.constant 0 : index
    %c0_38 = arith.constant 0 : index
    %61 = vector.load %arg3[%c0_37, %c0_38] : memref<1x128xf32, #tpu.memory_space<vmem>>, vector<1x128xf32>
    %62 = vector.broadcast %61 : vector<1x128xf32> to vector<16x128xf32>
    %63 = arith.mulf %59, %62 : vector<16x128xf32>
    %cst_39 = arith.constant dense<0.000000e+00> : vector<16xf32>
    %64 = vector.multi_reduction <add>, %63, %cst_39 [1] : vector<16x128xf32> to vector<16xf32>
    %65 = vector.shape_cast %64 : vector<16xf32> to vector<16x1xf32>
    %c0_40 = arith.constant 0 : index
    %c0_41 = arith.constant 0 : index
    %c0_42 = arith.constant 0 : index
    %66 = vector.load %arg5[%c0_40, %c0_41, %c0_42] : memref<1x16x1xf32, #tpu.memory_space<vmem>>, vector<1x16x1xf32>
    %67 = vector.shape_cast %66 : vector<1x16x1xf32> to vector<16x1xf32>
    %68 = vector.shape_cast %65 : vector<16x1xf32> to vector<1x16x1xf32>
    tpu.vector_store %arg5[%c0_40, %c0_41, %c0_42], %68 {strides = array<i32>} : memref<1x16x1xf32, #tpu.memory_space<vmem>>, vector<1x16x1xf32>,
    %69 = arith.mulf %63, %59 : vector<16x128xf32>
    %cst_43 = arith.constant dense<0.000000e+00> : vector<16xf32>
    %70 = vector.multi_reduction <add>, %69, %cst_43 [1] : vector<16x128xf32> to vector<16xf32>
    %71 = vector.shape_cast %70 : vector<16xf32> to vector<16x1xf32>
    %c0_44 = arith.constant 0 : index
    %c0_45 = arith.constant 0 : index
    %c0_46 = arith.constant 0 : index
    %72 = vector.load %arg6[%c0_44, %c0_45, %c0_46] : memref<1x16x1xf32, #tpu.memory_space<vmem>>, vector<1x16x1xf32>
    %73 = vector.shape_cast %72 : vector<1x16x1xf32> to vector<16x1xf32>
    %74 = vector.shape_cast %71 : vector<16x1xf32> to vector<1x16x1xf32>
    tpu.vector_store %arg6[%c0_44, %c0_45, %c0_46], %74 {strides = array<i32>} : memref<1x16x1xf32, #tpu.memory_space<vmem>>, vector<1x16x1xf32>,
    return
  }
  func.func @transform_0(%arg0: i32) -> (i32, i32, i32) {
    %c0_i32 = arith.constant 0 : i32
    %c0_i32_0 = arith.constant 0 : i32
    %c0_i32_1 = arith.constant 0 : i32
    %c0_i32_2 = arith.constant 0 : i32
    return %c0_i32, %c0_i32_0, %c0_i32_1 : i32, i32, i32
  }
  func.func @transform_1(%arg0: i32) -> (i32, i32, i32) {
    %c0_i32 = arith.constant 0 : i32
    %c0_i32_0 = arith.constant 0 : i32
    %c0_i32_1 = arith.constant 0 : i32
    %c0_i32_2 = arith.constant 0 : i32
    return %c0_i32, %c0_i32_0, %c0_i32_1 : i32, i32, i32
  }
  func.func @transform_2(%arg0: i32) -> (i32, i32) {
    %c0_i32 = arith.constant 0 : i32
    %c0_i32_0 = arith.constant 0 : i32
    return %c0_i32, %arg0 : i32, i32
  }
  func.func @transform_3(%arg0: i32) -> (i32, i32) {
    %c0_i32 = arith.constant 0 : i32
    %c0_i32_0 = arith.constant 0 : i32
    return %c0_i32, %arg0 : i32, i32
  }
  func.func @transform_4(%arg0: i32) -> (i32, i32, i32) {
    %c0_i32 = arith.constant 0 : i32
    %c0_i32_0 = arith.constant 0 : i32
    %c0_i32_1 = arith.constant 0 : i32
    return %arg0, %c0_i32, %c0_i32_0 : i32, i32, i32
  }
  func.func @transform_5(%arg0: i32) -> (i32, i32, i32) {
    %c0_i32 = arith.constant 0 : i32
    %c0_i32_0 = arith.constant 0 : i32
    %c0_i32_1 = arith.constant 0 : i32
    return %arg0, %c0_i32, %c0_i32_0 : i32, i32, i32
  }
}

</mosaic_0001>

<bundles_post_ra>
// kernel: tpu_custom_call.1
= control target key start
LH: loop header
LB: loop body
LE: loop exit
PB: predicated region body
PF: predicated region fallthrough
CT: control target
= control target key end

     0   :  { %11 = vsyncpa [#allocation3], 0  ;;  %s1197_s0 = inlined_call_operand.vmem [shape: f32[4,8,384], index: 0, kind: input, shape index: {}]   ;;  %s1198_s1 = inlined_call_operand.vmem [shape: f32[9,16,8], index: 1, kind: input, shape index: {}]   ;;  %s1199_s2 = inlined_call_operand.vmem [shape: f32[1,256], index: 2, kind: input, shape index: {}]   ;;  %s1200_s3 = inlined_call_operand.hbm [shape: f32[16,256], index: 3, kind: output, shape index: {0}]   ;;  %s1201_s4 = inlined_call_operand.vmem [shape: f32[2,16,1], index: 4, kind: output, shape index: {1}]   ;;  %s1202_s5 = inlined_call_operand.vmem [shape: f32[2,16,1], index: 5, kind: output, shape index: {2}]  }
   0x1   :  { %13 = vsyncpa [#allocation3 + $0x1], 0  ;;  %s1009_s18 = smov 0   ;;  %s1011_s19 = smov 0  }
   0x2   :  { %s1013_s20 = smov 0   ;;  %s1015_s21 = smov 0  }
   0x3 LB: > { %s1030_s22 = sadd.s32 4294967295, %s971_s21   ;;  %s778_s23 = sadd.s32 4294967294, %s971_s21   ;;  %s971_s21 = sphi %s1015_s21, %s1208_s21   ;;  %s967_s20 = sphi %s1013_s20, %s1207_s20   ;;  %s963_s19 = sphi %s1011_s19, %s1206_s19   ;;  %s959_s18 = sphi %s1009_s18, %s1205_s18  }
   0x4   : > { %s1034_s24 = sadd.s32 1, %s971_s21   ;;  %s94_s25 = sadd.s32 1, %s967_s20 }
   0x5   : > { %s91_s26 = ssub.s32 %s971_s21, %s1034_s24  ;;  %p104_p0 = scmp.ne.s32.totalorder %s967_s20, %s963_s19 }
   0x6   : > { %p92_p1 = scmp.eq.s32.totalorder %s91_s26, 0  ;;  %p105_p2 = scmp.eq.s32.totalorder %s1030_s22, 1 }
   0x7   : > { %p110_p3 = scmp.ne.s32.totalorder %s963_s19, %s959_s18  ;;  %p111_p4 = scmp.eq.s32.totalorder %s778_s23, 1 }
   0x8   : > { %s1045_s27 = scalar_select %p92_p1, %s967_s20, %s94_s25  }
   0x9   : > { %p1047_p5 = por %p105_p2, %p104_p0  ;;  %p1051_p6 = por %p111_p4, %p110_p3 }
   0xa   : > { %p781_p7 = scmp.ge.s32.totalorder %s971_s21, 1  ;;  %p193_p8 = scmp.lt.s32.totalorder %s971_s21, 3 }
   0xc   : > { %p194_p9 = pnand %p781_p7, %p193_p8 }
   0xd   : > { %s787_s30 = sshll.u32 (!%p194_p9), %s1030_s22, 7  ;;  %s973_s11 = smov (!%p194_p9), 127  }
   0xe   : > { %197 = sbr.rel (%p194_p9) target bundleno = 432 (0x1b0), region = 32  ;;  %s243_s6 = sshra.s32 (!%p194_p9), %s787_s30, 7 }
   0xf   : > { %s788_s7 = sshll.u32 (!%p194_p9), %s243_s6, 3  ;;  %s974_s12 = smov (!%p194_p9), 118  }
  0x10   : > { %s1061_s10 = scalar_lea.vmem (!%p194_p9), %s1197_s0, %s788_s7  ;;  %s975_s13 = smov (!%p194_p9), 119  }
  0x11   : > { %p229_p10 = scmp.lt.s32.totalorder (!%p194_p9), %s1030_s22, 1  ;;  %s212_s6 = sand.u32 (!%p194_p9), 1, %s963_s19  }
  0x12   : > { %s782_s7 = sshll.u32 (!%p194_p9), %s212_s6, 4  ;;  %s832_s8 = sshll.u32 (!%p194_p9), %s1030_s22, 3 }
  0x13   : > { %v247_v0 = vld [vmem:[%s1061_s10] sm:$0xff]  ;;  %v248_v1 = vld [vmem:[%s1061_s10 + $0x8] sm:$0xff]  ;;  %v804_v3 = vld [vmem:[%s1061_s10 + $0x18] sm:$0xff]  ;;  %vm260_vm0 = vcmask 1039360   ;;  %vm370_vm1 = vcmask 965632   ;;  %vm263_vm2 = vcmask 64512  }
  0x14   : > { %v883_v2 = vpack.i.bf16 %v248_v1, %v247_v0  ;;  %v805_v4 = vld [vmem:[%s1061_s10 + $0x20] sm:$0xff]  ;;  %v815_v6 = vld [vmem:[%s1061_s10 + $0x30] sm:$0xff]  ;;  %v816_v7 = vld [vmem:[%s1061_s10 + $0x38] sm:$0xff]  ;;  %vm329_vm3 = vcmask 973824   ;;  %s1142_s16 = scalar_select %p229_p10, %s1030_s22, 1 }
  0x15   : > { %v903_v5 = vpack.i.bf16 %v805_v4, %v804_v3  ;;  %v898_v8 = vpack.i.bf16 %v816_v7, %v815_v6  ;;  %v790_v18 = vld [vmem:[%s1198_s1 + $0x28] sm:$0xff]  ;;  %v789_v21 = vld [vmem:[%s1198_s1 + $0x20] sm:$0xff]  ;;  %v806_v35 = vld [vmem:[%s1198_s1 + $0x10] sm:$0xff]  ;;  %s628_s14 = scalar_lea.sflag [#allocation3], %s212_s6  ;;  %s929_s26 = scalar_lea.hbm %s1200_s3, 32 }
  0x16   : > { %884 = vrot.lane.b32.xlu0 %v883_v2, %s973_s11  ;;  %894 = vrot.lane.b32.xlu1 %v883_v2, %s974_s12  ;;  %v799_v22 = vld [vmem:[%s1198_s1 + $0x80] sm:$0xff]  ;;  %v826_v24 = vld [vmem:[%s1061_s10 + $0x48] sm:$0xff]  ;;  %s231_s30 = scalar_lea.vmem %s1199_s2, %s1142_s16  ;;  %s214_s12 = scalar_lea.vmem [#allocation2], %s782_s7 }
  0x17   : > { %904 = vrot.lane.b32.xlu2 %v903_v5, %s975_s13  ;;  %v249_v31 = vld [vmem:[%s1198_s1] sm:$0xff]  ;;  %v800_v36 = vld [vmem:[%s1198_s1 + $0x88] sm:$0xff]  ;;  %v807_v39 = vld [vmem:[%s1198_s1 + $0x18] sm:$0xff] }
  0x18   : > { %v795_v32 = vld [vmem:[%s1198_s1 + $0x60] sm:$0xff]  ;;  %v250_v37 = vld [vmem:[%s1198_s1 + $0x8] sm:$0xff]  ;;  %v821_v40 = vld [vmem:[%s1198_s1 + $0x50] sm:$0xff] }
  0x19   : > { %v796_v38 = vld [vmem:[%s1198_s1 + $0x68] sm:$0xff]  ;;  %v810_v41 = vld [vmem:[%s1198_s1 + $0x70] sm:$0xff]  ;;  %v827_v43 = vld [vmem:[%s1198_s1 + $0x40] sm:$0xff] }
  0x1a   : > { %v817_v42 = vld [vmem:[%s1198_s1 + $0x30] sm:$0xff]  ;;  %v822_v44 = vld [vmem:[%s1198_s1 + $0x58] sm:$0xff]  ;;  %v828_v47 = vld [vmem:[%s1198_s1 + $0x48] sm:$0xff] }
  0x1b   : > { %v811_v45 = vld [vmem:[%s1198_s1 + $0x78] sm:$0xff] }
  0x1c   : > { %v818_v46 = vld [vmem:[%s1198_s1 + $0x38] sm:$0xff] }
  0x1e   : > { %889 = vrot.lane.b32.xlu0 %v883_v2, %s975_s13  ;;  %899 = vrot.lane.b32.xlu1 %v898_v8, %s973_s11  ;;  %v908_v8 = vld [vmem:[%s231_s30] ss:$0 sm:$0xff]  ;;  %s648_s11 = scalar_lea.hbm %s1200_s3, %s832_s8  ;;  %s649_s13 = sshll.u32 %s214_s12, 4  ;;  %s650_s13 = int_to_ptr.vmem [resolvable:$true] %s649_s13 }
  0x1f   : > { %s651_s22 = sshll.u32 %s648_s11, 4  ;;  %s652_s22 = int_to_ptr.hbm [resolvable:$true] %s651_s22 }
  0x20   : > { %s923_s15 = sshra.s32 %s652_s22, 4  ;;  %s924_s15 = int_to_ptr.hbm [resolvable:$true] %s923_s15 }
  0x21   : > { %s925_s17 = scalar_lea.hbm %s924_s15, 16  ;;  %p930_p0 = scmp.lt.s32.totalorder %s924_s15, %s1200_s3 }
  0x22   : > { %p926_p11 = scmp.ne.s32.totalorder %s924_s15, %s925_s17  ;;  %p931_p1 = scmp.lt.s32.totalorder %s929_s26, %s925_s17 }
  0x24   : > { %p927_p12 = pnand %p926_p11, %p1047_p5  ;;  %p932_p2 = por %p931_p1, %p930_p0 }
  0x26   : > { %p928_p13 = pneg %p927_p12 }
  0x28   : > { %p933_p3 = pnand %p932_p2, %p928_p13 }
  0x71   : > { %v905_v9 = vpop.permute.xlu2 %904 }
  0x72   : > { %v907_v12 = vunpack.i.h.bf16 %v905_v9  ;;  %v906_v13 = vunpack.i.l.bf16 %v905_v9 }
  0x74   : > { %v452_v23 = vsel %vm329_vm3, %v906_v13, %v907_v12 }
  0x88   : > { %v885_v10 = vpop.permute.xlu0 %884  ;;  %v895_v11 = vpop.permute.xlu1 %894 }
  0x89   : > { %v887_v14 = vunpack.i.h.bf16 %v885_v10  ;;  %v886_v15 = vunpack.i.l.bf16 %v885_v10  ;;  %v897_v16 = vunpack.i.h.bf16 %v895_v11  ;;  %v896_v17 = vunpack.i.l.bf16 %v895_v11 }
  0x8b   : > { %v261_v19 = vsel %vm260_vm0, %v886_v15, %v887_v14  ;;  %v371_v20 = vsel %vm370_vm1, %v896_v17, %v897_v16 }
  0x8c   : > { %285 = vmatpush.msra.mxu0 %v261_v19  ;;  %837 = vmatpush.msra.mxu1 %v261_v19 }
  0x8d   : > { %792 = vmatmul.msk.f32.vlgmr.msra.gmra.mxu1 %vm263_vm2, %v790_v18  ;;  %394 = vmatpush.msra.mxu3 %v371_v20 }
  0x8e   : > { %314 = vmatpush.msrb.mxu1 %v247_v0  ;;  %791 = vmatmul.msk.f32.vlgmr.msra.gmra.mxu0 %vm263_vm2, %v789_v21 }
  0x8f   : > { %801 = vmatmul.msk.f32.vlgmr.msra.gmra.mxu3 %vm263_vm2, %v799_v22  ;;  %433 = vmatpush.msrb.mxu0 %v804_v3 }
  0x90   : > { %v890_v25 = vpop.permute.xlu0 %889  ;;  %v900_v26 = vpop.permute.xlu1 %899  ;;  %475 = vmatpush.msra.mxu1 %v452_v23 }
  0x91   : > { %594 = vmatpush.msra.mxu0 %v826_v24  ;;  %v892_v27 = vunpack.i.h.bf16 %v890_v25  ;;  %v891_v28 = vunpack.i.l.bf16 %v890_v25  ;;  %v902_v29 = vunpack.i.h.bf16 %v900_v26  ;;  %v901_v30 = vunpack.i.l.bf16 %v900_v26 }
  0x93   : > { %v330_v33 = vsel %vm329_vm3, %v891_v28, %v892_v27  ;;  %v533_v34 = vsel %vm260_vm0, %v901_v30, %v902_v29 }
  0x94   : > { %353 = vmatpush.msra.mxu2 %v330_v33  ;;  %556 = vmatpush.msrb.mxu3 %v533_v34 }
  0x95   : > { %793 = vmatmul.msk.f32.vlgmr.msrb.gmra.mxu1 %vm263_vm2, %v249_v31  ;;  %797 = vmatmul.msk.f32.vlgmr.msra.gmra.mxu2 %vm263_vm2, %v795_v32 }
  0x96   : > { %514 = vmatpush.msrb.mxu2 %v815_v6  ;;  %808 = vmatmul.msk.f32.vlgmr.msrb.gmra.mxu0 %vm263_vm2, %v806_v35 }
  0x97   : > { %802 = vmatmul.msk.f32.gmra.mxu3 %vm263_vm2, %v800_v36 }
  0x9d   : > { %794 = vmatmul.msk.f32.gmra.mxu1 %vm263_vm2, %v250_v37  ;;  %798 = vmatmul.msk.f32.gmra.mxu2 %vm263_vm2, %v796_v38 }
  0x9e   : > { %809 = vmatmul.msk.f32.gmra.mxu0 %vm263_vm2, %v807_v39 }
  0x9f   : > { %823 = vmatmul.msk.f32.vlgmr.msrb.gmra.mxu3 %vm263_vm2, %v821_v40 }
  0xa5   : > { %812 = vmatmul.msk.f32.vlgmr.msra.gmra.mxu1 %vm263_vm2, %v810_v41  ;;  %819 = vmatmul.msk.f32.vlgmr.msrb.gmra.mxu2 %vm263_vm2, %v817_v42 }
  0xa6   : > { %829 = vmatmul.msk.f32.vlgmr.msra.gmra.mxu0 %vm263_vm2, %v827_v43 }
  0xa7   : > { %824 = vmatmul.msk.f32.gmra.mxu3 %vm263_vm2, %v822_v44 }
  0xad   : > { %813 = vmatmul.msk.f32.gmra.mxu1 %vm263_vm2, %v811_v45  ;;  %820 = vmatmul.msk.f32.gmra.mxu2 %vm263_vm2, %v818_v46 }
  0xae   : > { %830 = vmatmul.msk.f32.gmra.mxu0 %vm263_vm2, %v828_v47 }
 0x10a   : > { %v290_v48 = vpop.f32.mrf.mxu1 }
 0x10b   : > { %v287_v49 = vpop.f32.mrf.mxu0 }
 0x112   : > { %v316_v50 = vpop.f32.mrf.mxu1  ;;  %v396_v51 = vpop.f32.mrf.mxu3 }
 0x113   : > { %v435_v52 = vpop.f32.mrf.mxu0  ;;  %v317_v55 = vadd.f32 %v316_v50, %v287_v49 }
 0x118   : > { %v355_v53 = vpop.f32.mrf.mxu2 }
 0x119   : > { %v361_v57 = vadd.f32 %v355_v53, %v317_v55 }
 0x11a   : > { %v319_v54 = vpop.f32.mrf.mxu1  ;;  %v399_v56 = vpop.f32.mrf.mxu3 }
 0x11b   : > { %v438_v58 = vpop.f32.mrf.mxu0  ;;  %v402_v60 = vadd.f32 %v396_v51, %v361_v57  ;;  %v320_v62 = vadd.f32 %v319_v54, %v290_v48 }
 0x11d   : > { %v441_v63 = vadd.f32 %v435_v52, %v402_v60 }
 0x120   : > { %v358_v59 = vpop.f32.mrf.mxu2 }
 0x121   : > { %v362_v0 = vadd.f32 %v358_v59, %v320_v62 }
 0x122   : > { %v477_v61 = vpop.f32.mrf.mxu1  ;;  %v558_v1 = vpop.f32.mrf.mxu3 }
 0x123   : > { %v483_v2 = vadd.f32 %v477_v61, %v441_v63  ;;  %v596_v4 = vpop.f32.mrf.mxu0  ;;  %v403_v5 = vadd.f32 %v399_v56, %v362_v0 }
 0x125   : > { %v442_v10 = vadd.f32 %v438_v58, %v403_v5 }
 0x128   : > { %v516_v3 = vpop.f32.mrf.mxu2 }
 0x129   : > { %v522_v6 = vadd.f32 %v516_v3, %v483_v2 }
 0x12a   : > { %v480_v9 = vpop.f32.mrf.mxu1  ;;  %v561_v15 = vpop.f32.mrf.mxu3 }
 0x12b   : > { %v564_v7 = vadd.f32 %v558_v1, %v522_v6  ;;  %v484_v12 = vadd.f32 %v480_v9, %v442_v10  ;;  %v599_v18 = vpop.f32.mrf.mxu0 }
 0x12d   : > { %v602_v11 = vadd.f32 %v596_v4, %v564_v7 }
 0x12f   : > { %604 = vst [vmem:[%s214_s12] sm:$0xff] %v602_v11  ;;  %v610_v13 = vmul.f32 %v908_v8, %v602_v11 }
 0x130   : > { %v519_v14 = vpop.f32.mrf.mxu2 }
 0x131   : > { %v523_v16 = vadd.f32 %v519_v14, %v484_v12  ;;  %612 = vadd.xlane.f32.xlu2 %v610_v13  ;;  %v619_v17 = vmul.f32 %v610_v13, %v602_v11 }
 0x133   : > { %v565_v19 = vadd.f32 %v561_v15, %v523_v16  ;;  %621 = vadd.xlane.f32.xlu1 %v619_v17 }
 0x135   : > { %v603_v20 = vadd.f32 %v599_v18, %v565_v19 }
 0x137   : > { %605 = vst [vmem:[%s214_s12 + $0x8] sm:$0xff] %v603_v20  ;;  %v611_v21 = vmul.f32 %v908_v8, %v603_v20 }
 0x138   : > { %936 = shalt.err (!%p933_p3)
}
 0x139   : > { %s976_s6 = smov 128   ;;  %s977_s8 = smov 256   ;;  %614 = vadd.xlane.f32.xlu0 %v611_v21  ;;  %v620_v22 = vmul.f32 %v611_v21, %v603_v20  ;;  %vm616_vm4 = vcmask 7168  }
 0x13a   : > { %s978_s9 = smov 8   ;;  %s835_s10 = sshll.u32 %s1142_s16, 4 }
 0x13b   : > { %838 = dma.vmem_to_hbm [thread:$0]  (%p1047_p5), %s650_s13, 256, %s652_s22, %s628_s14, %s976_s6, %s977_s8, %s978_s9   ;;  %623 = vadd.xlane.f32.xlu2 %v620_v22 }
 0x13c   : > { %s236_s23 = scalar_lea.vmem %s1201_s4, %s835_s10  ;;  %s241_s25 = scalar_lea.vmem %s1202_s5, %s835_s10 }
 0x1a4   : > { %v613_v23 = vpop.xlane.xlu2 %612 }
 0x1a5   : > { %617 = vst.msk [vmem:[%s236_s23] sm:$0xff] %vm616_vm4, %v613_v23 }
 0x1a6   : > { %v622_v24 = vpop.xlane.xlu1 %621 }
 0x1a7   : > { %625 = vst.msk [vmem:[%s241_s25] sm:$0xff] %vm616_vm4, %v622_v24 }
 0x1ac   : > { %v615_v25 = vpop.xlane.xlu0 %614 }
 0x1ad   : > { %618 = vst.msk [vmem:[%s236_s23 + $0x8] sm:$0xff] %vm616_vm4, %v615_v25 }
 0x1ae   : > { %v624_v26 = vpop.xlane.xlu2 %623 }
 0x1af   : > { %626 = vst.msk [vmem:[%s241_s25 + $0x8] sm:$0xff] %vm616_vm4, %v624_v26 }
 0x1b0 PF: > { %p844_p4 = scmp.ge.s32.totalorder %s971_s21, 2  ;;  %s672_s28 = sand.u32 1, %s959_s18  }
 0x1b1   : > { %s673_s16 = scalar_lea.sflag [#allocation3], %s672_s28 }
 0x1b2   : > { %p841_p5 = pnand %p844_p4, %p1051_p6 }
 0x1b4   : > { %p842_p7 = pneg %p841_p5 }
 0x1b6   : > { %954 = dma.done.wait (%p842_p7), %s673_s16, 256  }
 0x1b7   : > { %956 = vsyncadd (%p842_p7), %s673_s16, 4294967040  ;;  %p16_p8 = scmp.ge.s32.totalorder %s1034_s24, 4   ;;  %s1205_s18 = smov %s963_s19 }
 0x1b8   : > { %s1206_s19 = smov %s967_s20  ;;  %s1207_s20 = smov %s1045_s27 }
 0x1b9   : > { %s1208_s21 = smov %s1034_s24  ;;  %18 = sbr.rel (!%p16_p8) target bundleno = 3 (0x3), region = 103 }
 0x1be   :  { %695 = vsyncpa [#allocation3], 1 }
 0x1bf   :  { %697 = vsyncpa [#allocation3 + $0x1], 1 }

</bundles_post_ra>
